<compile_context>
chip_gen: v7x
topology: tpu7x:2x2x1
jax: 0.10.0
libtpu: 0.0.40
codegen_flags: <defaults>
</compile_context>

<pallas_src>
import functools

import jax
import jax.numpy as jnp
from jax import lax
from jax.experimental import pallas as pl
from jax.experimental.pallas import tpu as pltpu

_LANE = 128


def _relu(v):
    return jnp.maximum(v, 0.0)


def _mlp_kernel(x_ref, w1_ref, b1_ref, w2_ref, b2_ref, o_ref, *, act):
    # layer 1: contract the shared F axis directly: W1 (H, F) . x (TB, F)^T
    # -> lane-dense (H, TB) on the MXU with f32 accumulation.  The implied
    # transpose of the small x tile goes to the XLU (idle here).
    h = lax.dot_general(
        w1_ref[...], x_ref[...],
        dimension_numbers=(((1,), (1,)), ((), ())),
        preferred_element_type=jnp.float32,
    )
    h = act(h + b1_ref[...])                 # b1 is (H, 1): broadcast over lanes
    # layer 2 (out_features == 1): VPU multiply + sublane (XLU) reduction
    # instead of a width-1 MXU matmul; result is already lane-dense (1, TB).
    y = jnp.sum(h * w2_ref[...], axis=0, keepdims=True)
    y = y + b2_ref[0, 0]                     # scalar bias from SMEM
    o_ref[...] = y.astype(o_ref.dtype)       # unmasked, lane-dense store


def regression_model_forward(x, w1, b1, w2, b2, *, act=_relu,
                             block_b=4096, input_dtype=None):
    """Forward pass of RegressionModel.

    x : (B, F)   input batch (streamed in natural layout, no wrapper transpose)
    w1: (H, F)   linear1.weight  (PyTorch (out, in) layout)
    b1: (H,)     linear1.bias
    w2: (1, H)   linear2.weight
    b2: (1,)     linear2.bias
    input_dtype: optional (e.g. jnp.bfloat16) to halve x/W1 HBM traffic;
                 accumulation stays f32.
    Returns (B, 1) float32, matching the PyTorch module.
    """
    B, F = x.shape
    H = w1.shape[0]

    if input_dtype is not None:
        x = x.astype(input_dtype)
        w1 = w1.astype(input_dtype)

    # ---- batch-tile selection -------------------------------------------
    B_lane = _LANE * pl.cdiv(B, _LANE)                 # batch rounded to lanes
    block_b = max(_LANE, (block_b // _LANE) * _LANE)   # lane-aligned request
    TB = min(block_b, B_lane)
    # v7x has 2 TensorCores; keep >= 2 grid steps when the batch allows it so
    # the "parallel" batch axis uses both (no-op on single-TC v5e/v6e).
    if B_lane >= 2 * _LANE and TB >= B_lane:
        TB = _LANE * pl.cdiv(B_lane // 2, _LANE)
    # VMEM budget clamp: 2x double-buffered (TB, F) x tiles + (H, TB) f32
    # hidden + 2x (1, TB) output tiles + resident weights.  Keep under
    # ~12 MiB (v5e default scoped VMEM is 16 MiB; v7x physical is 64 MiB).
    x_bytes = jnp.dtype(x.dtype).itemsize
    col_bytes = 2 * F * x_bytes + 4 * H + 8
    budget = 12 * 1024 * 1024 - x_bytes * H * F - 4 * (3 * H + 1)
    max_tb = max(_LANE, (budget // col_bytes) // _LANE * _LANE)
    TB = min(TB, max_tb)

    grid_b = pl.cdiv(B, TB)
    B_pad = TB * grid_b

    b1_col = b1.reshape(H, 1).astype(jnp.float32)
    w2_col = w2.reshape(H, 1).astype(jnp.float32)
    b2_smem = b2.reshape(1, 1).astype(jnp.float32)

    out = pl.pallas_call(
        functools.partial(_mlp_kernel, act=act),
        out_shape=jax.ShapeDtypeStruct((1, B_pad), jnp.float32),
        grid=(grid_b,),
        in_specs=[
            pl.BlockSpec((TB, F), lambda i: (i, 0)),            # x streamed, natural layout
            pl.BlockSpec((H, F), lambda i: (0, 0)),             # resident W1
            pl.BlockSpec((H, 1), lambda i: (0, 0)),             # resident b1
            pl.BlockSpec((H, 1), lambda i: (0, 0)),             # resident w2 column
            pl.BlockSpec(memory_space=pltpu.MemorySpace.SMEM),  # b2 scalar
        ],
        out_specs=pl.BlockSpec((1, TB), lambda i: (0, i)),      # lane-dense out
        compiler_params=pltpu.CompilerParams(
            dimension_semantics=("parallel",),       # v7x: batch split over 2 TCs
            vmem_limit_bytes=48 * 1024 * 1024,       # past v5e's 16 MiB default
        ),
    )(x, w1, b1_col, w2_col, b2_smem)

    # (1, B_pad) lane-dense -> (B, 1) to match PyTorch (padded lanes dropped).
    return out[0, :B].reshape(B, 1)


def init_params(key, in_features, hidden_num):
    """xavier_normal_ weights, zero biases, PyTorch (out, in) layout."""
    k1, k2 = jax.random.split(key)
    std1 = (2.0 / (in_features + hidden_num)) ** 0.5
    std2 = (2.0 / (hidden_num + 1)) ** 0.5
    w1 = std1 * jax.random.normal(k1, (hidden_num, in_features), jnp.float32)
    b1 = jnp.zeros((hidden_num,), jnp.float32)
    w2 = std2 * jax.random.normal(k2, (1, hidden_num), jnp.float32)
    b2 = jnp.zeros((1,), jnp.float32)
    return w1, b1, w2, b2


def _reference(x, w1, b1, w2, b2):
    return jnp.maximum(x @ w1.T + b1, 0.0) @ w2.T + b2


if __name__ == "__main__":
    in_features, hidden_num = 16, 32
    key = jax.random.PRNGKey(0)
    kx1, kx2, kp = jax.random.split(key, 3)
    w1, b1, w2, b2 = init_params(kp, in_features, hidden_num)

    # Case 1: tiny batch (single grid step; ragged block padded to one
    # 128-lane tile, padded lanes sliced off).
    x = jax.random.normal(kx1, (8, in_features), jnp.float32)
    out = jax.block_until_ready(regression_model_forward(x, w1, b1, w2, b2))
    ref = _reference(x, w1, b1, w2, b2)
    assert out.shape == (8, 1)
    assert jnp.allclose(out, ref, atol=1e-5, rtol=1e-5)

    # Case 2: ragged batch over a multi-step grid (exercises resident
    # weights, boundary x blocks, and the parallel batch axis).
    x2 = jax.random.normal(kx2, (200, in_features), jnp.float32)
    out2 = jax.block_until_ready(
        regression_model_forward(x2, w1, b1, w2, b2, block_b=128)
    )
    ref2 = _reference(x2, w1, b1, w2, b2)
    assert out2.shape == (200, 1)
    assert jnp.allclose(out2, ref2, atol=1e-5, rtol=1e-5)

    # Case 3: bf16 input stream (halves x HBM traffic), f32 accumulation.
    out3 = jax.block_until_ready(
        regression_model_forward(x2, w1, b1, w2, b2, input_dtype=jnp.bfloat16)
    )
    assert out3.shape == (200, 1)
    assert jnp.allclose(out3, ref2, atol=5e-2, rtol=5e-2)

    print("KERNEL_OK")
</pallas_src>

<mosaic_0001>
module attributes {stable_mosaic.version = 11 : i64} {
  func.func @_mlp_kernel(%arg0: i32, %arg1: memref<128x16xf32, #tpu.memory_space<vmem>>, %arg2: memref<32x16xf32, #tpu.memory_space<vmem>>, %arg3: memref<32x1xf32, #tpu.memory_space<vmem>>, %arg4: memref<32x1xf32, #tpu.memory_space<vmem>>, %arg5: memref<1x1xf32, #tpu.memory_space<smem>>, %arg6: memref<1x128xf32, #tpu.memory_space<vmem>>) attributes {dimension_semantics = [#tpu.dimension_semantics<parallel>], iteration_bounds = array<i64: 1>, scalar_prefetch = 0 : i64, scratch_operands = 0 : i64, tpu.core_type = #tpu.core_type<tc>, window_params = [{transform_indices = @transform_0, window_bounds = array<i64: 128, 16>}, {pipeline_mode = #tpu.pipeline_mode<synchronous>, transform_indices = @transform_1, window_bounds = array<i64: 32, 16>}, {pipeline_mode = #tpu.pipeline_mode<synchronous>, transform_indices = @transform_2, window_bounds = array<i64: 32, 1>}, {pipeline_mode = #tpu.pipeline_mode<synchronous>, transform_indices = @transform_3, window_bounds = array<i64: 32, 1>}, {transform_indices = @transform_4, window_bounds = array<i64: 1, 1>}, {transform_indices = @transform_5, window_bounds = array<i64: 1, 128>}]} {
    %c0 = arith.constant 0 : index
    %c0_0 = arith.constant 0 : index
    %0 = vector.load %arg2[%c0, %c0_0] : memref<32x16xf32, #tpu.memory_space<vmem>>, vector<32x16xf32>
    %c0_1 = arith.constant 0 : index
    %c0_2 = arith.constant 0 : index
    %1 = vector.load %arg1[%c0_1, %c0_2] : memref<128x16xf32, #tpu.memory_space<vmem>>, vector<128x16xf32>
    %cst = arith.constant dense<0.000000e+00> : vector<32x128xf32>
    %2 = tpu.matmul %0, %1, %cst {dimension_numbers = #tpu.dot_dimension_numbers<[1], [1], [0], [0], [0, 0, 1, 0], [], []>} : vector<32x16xf32>, vector<128x16xf32>, vector<32x128xf32> -> vector<32x128xf32>
    %c0_3 = arith.constant 0 : index
    %c0_4 = arith.constant 0 : index
    %3 = vector.load %arg3[%c0_3, %c0_4] : memref<32x1xf32, #tpu.memory_space<vmem>>, vector<32x1xf32>
    %4 = vector.broadcast %3 : vector<32x1xf32> to vector<32x128xf32>
    %5 = arith.addf %2, %4 : vector<32x128xf32>
    %cst_5 = arith.constant 0.000000e+00 : f32
    %6 = vector.broadcast %cst_5 : f32 to vector<32x128xf32>
    %7 = arith.maximumf %5, %6 : vector<32x128xf32>
    %c0_6 = arith.constant 0 : index
    %c0_7 = arith.constant 0 : index
    %8 = vector.load %arg4[%c0_6, %c0_7] : memref<32x1xf32, #tpu.memory_space<vmem>>, vector<32x1xf32>
    %9 = vector.broadcast %8 : vector<32x1xf32> to vector<32x128xf32>
    %10 = arith.mulf %7, %9 : vector<32x128xf32>
    %cst_8 = arith.constant dense<0.000000e+00> : vector<128xf32>
    %11 = vector.multi_reduction <add>, %10, %cst_8 [0] : vector<32x128xf32> to vector<128xf32>
    %12 = vector.shape_cast %11 : vector<128xf32> to vector<1x128xf32>
    %c0_9 = arith.constant 0 : index
    %c0_10 = arith.constant 0 : index
    %13 = memref.load %arg5[%c0_9, %c0_10] : memref<1x1xf32, #tpu.memory_space<smem>>
    %14 = vector.broadcast %13 : f32 to vector<1x128xf32>
    %15 = arith.addf %12, %14 : vector<1x128xf32>
    %c0_11 = arith.constant 0 : index
    %c0_12 = arith.constant 0 : index
    %16 = vector.load %arg6[%c0_11, %c0_12] : memref<1x128xf32, #tpu.memory_space<vmem>>, vector<1x128xf32>
    tpu.vector_store %arg6[%c0_11, %c0_12], %15 {strides = array<i32>} : memref<1x128xf32, #tpu.memory_space<vmem>>, vector<1x128xf32>,
    return
  }
  func.func @transform_0(%arg0: i32) -> (i32, i32) {
    %c0_i32 = arith.constant 0 : i32
    %c0_i32_0 = arith.constant 0 : i32
    return %arg0, %c0_i32 : i32, i32
  }
  func.func @transform_1(%arg0: i32) -> (i32, i32) {
    %c0_i32 = arith.constant 0 : i32
    %c0_i32_0 = arith.constant 0 : i32
    %c0_i32_1 = arith.constant 0 : i32
    return %c0_i32, %c0_i32_0 : i32, i32
  }
  func.func @transform_2(%arg0: i32) -> (i32, i32) {
    %c0_i32 = arith.constant 0 : i32
    %c0_i32_0 = arith.constant 0 : i32
    %c0_i32_1 = arith.constant 0 : i32
    return %c0_i32, %c0_i32_0 : i32, i32
  }
  func.func @transform_3(%arg0: i32) -> (i32, i32) {
    %c0_i32 = arith.constant 0 : i32
    %c0_i32_0 = arith.constant 0 : i32
    %c0_i32_1 = arith.constant 0 : i32
    return %c0_i32, %c0_i32_0 : i32, i32
  }
  func.func @transform_4(%arg0: i32) -> (i32, i32) {
    %c0_i32 = arith.constant 0 : i32
    %c0_i32_0 = arith.constant 0 : i32
    %c0_i32_1 = arith.constant 0 : i32
    return %c0_i32, %c0_i32_0 : i32, i32
  }
  func.func @transform_5(%arg0: i32) -> (i32, i32) {
    %c0_i32 = arith.constant 0 : i32
    %c0_i32_0 = arith.constant 0 : i32
    return %c0_i32, %arg0 : i32, i32
  }
}

</mosaic_0001>

<bundles_post_ra>
// kernel: tpu_custom_call.1
= control target key start
LH: loop header
LB: loop body
LE: loop exit
PB: predicated region body
PF: predicated region fallthrough
CT: control target
= control target key end

     0   :  { %vm66_vm0 = vcmask 130048   ;;  %v441_v6 = vmov 0   ;;  %s646_s0 = inlined_call_operand.vmem [shape: f32[8,16], index: 0, kind: input, shape index: {}]   ;;  %s647_s1 = inlined_call_operand.vmem [shape: f32[32,16], index: 1, kind: input, shape index: {}]   ;;  %s648_s2 = inlined_call_operand.vmem [shape: f32[32,1], index: 2, kind: input, shape index: {}]   ;;  %s649_s3 = inlined_call_operand.vmem [shape: f32[32,1], index: 3, kind: input, shape index: {}]   ;;  %s650_s4 = inlined_call_operand.<no memory space> [shape: f32[1,1], index: 4, kind: input, shape index: {}]   ;;  %s651_s5 = inlined_call_operand.hbm [shape: f32[1,128], index: 5, kind: output, shape index: {}]  }
   0x1   :  { %v26_v0 = vld [vmem:[%s646_s0] sm:$0xff]  ;;  %v27_v1 = vld [vmem:[%s646_s0 + $0x8] sm:$0xff]  ;;  %v28_v2 = vld [vmem:[%s646_s0 + $0x10] sm:$0xff]  ;;  %415 = vset.pattern.permute.xlu0 %v441_v6  ;;  %416 = vset.pattern.permute.xlu1 %v441_v6 }
   0x2   :  { %v349_v3 = vpack.c.bf16 %v27_v1, %v26_v0  ;;  %vm484_vm1 = vmpackc.low %vm66_vm0, %vm66_vm0  ;;  %v29_v5 = vld [vmem:[%s646_s0 + $0x18] sm:$0xff]  ;;  %v22_v8 = vld [vmem:[%s647_s1] sm:$0xff] }
   0x3   :  { %v355_v7 = vpack.c.bf16 %v29_v5, %v28_v2  ;;  %v30_v9 = vld [vmem:[%s646_s0 + $0x20] sm:$0xff]  ;;  %v31_v10 = vld [vmem:[%s646_s0 + $0x28] sm:$0xff]  ;;  %343 = vmatprep.mubr.msk.f32.mxu0 %vm66_vm0, %v22_v8  ;;  %v24_v11 = vld [vmem:[%s647_s1 + $0x10] sm:$0xff] }
   0x4   :  { %351 = vmatprep.subr.msk.bf16.mxu0 %vm484_vm1, %v349_v3  ;;  %397 = vmatprep.subr.msk.bf16.mxu1 %vm484_vm1, %v349_v3  ;;  %v42_v12 = vld [vmem:[%s648_s2] sm:$0xff]  ;;  %v44_v13 = vld [vmem:[%s648_s2 + $0x10] sm:$0xff]  ;;  %v361_v14 = vpack.c.bf16 %v31_v10, %v30_v9 }
   0x5   :  { %354 = vmatpush3.bf16.xpose.msk.msra.mxu0 %vm484_vm1, %v349_v3  ;;  %405 = vmatpush3.bf16.xpose.msk.msra.mxu1 %vm484_vm1, %v349_v3 }
   0x6   :  { %357 = vmatprep.subr.msk.bf16.mxu0 %vm484_vm1, %v355_v7  ;;  %398 = vmatprep.subr.msk.bf16.mxu1 %vm484_vm1, %v355_v7 }
   0x7   :  { %346 = vmatprep.mubr.msk.f32.mxu1 %vm66_vm0, %v24_v11  ;;  %48 = vperm.xlu0 %415, %v42_v12  }
   0x8   :  { %58 = vperm.xlu1 %416, %v44_v13  }
   0x9   :  { %11 = vsyncpa [#allocation4], 0  ;;  %v43_v15 = vld [vmem:[%s648_s2 + $0x8] sm:$0xff]  ;;  %v45_v16 = vld [vmem:[%s648_s2 + $0x18] sm:$0xff]  ;;  %v254_v6 = vstv %s650_s4  ;;  %s442_s21 = smov [#allocation3]  }
   0xa   :  { %v32_v17 = vld [vmem:[%s646_s0 + $0x30] sm:$0xff]  ;;  %v33_v18 = vld [vmem:[%s646_s0 + $0x38] sm:$0xff]  ;;  %v216_v19 = vld [vmem:[%s649_s3] sm:$0xff]  ;;  %s263_s22 = sshll.u32 %s442_s21, 4  ;;  %s264_s22 = int_to_ptr.vmem [resolvable:$true] %s263_s22 }
   0xb   :  { %53 = vperm.xlu0 %415, %v43_v15   ;;  %v217_v20 = vld [vmem:[%s649_s3 + $0x8] sm:$0xff]  ;;  %v367_v21 = vpack.c.bf16 %v33_v18, %v32_v17  ;;  %v218_v22 = vld [vmem:[%s649_s3 + $0x10] sm:$0xff]  ;;  %v219_v23 = vld [vmem:[%s649_s3 + $0x18] sm:$0xff]  ;;  %s417_s23 = scalar_lea.vmem %s264_s22, 16  ;;  %s421_s24 = scalar_lea.vmem %s264_s22, 32 }
   0xc   :  { %63 = vperm.xlu1 %416, %v45_v16   ;;  %v34_v24 = vld [vmem:[%s646_s0 + $0x40] sm:$0xff]  ;;  %v35_v25 = vld [vmem:[%s646_s0 + $0x48] sm:$0xff]  ;;  %v36_v27 = vld [vmem:[%s646_s0 + $0x50] sm:$0xff]  ;;  %p418_p0 = scmp.ne.s32.totalorder %s264_s22, %s417_s23  ;;  %p422_p1 = scmp.lt.s32.totalorder %s264_s22, %s264_s22 }
   0xd   :  { %360 = vmatpush3.bf16.xpose.msk.msra.mxu0 %vm484_vm1, %v355_v7  ;;  %406 = vmatpush3.bf16.xpose.msk.msra.mxu1 %vm484_vm1, %v355_v7  ;;  %v373_v26 = vpack.c.bf16 %v35_v25, %v34_v24  ;;  %v37_v28 = vld [vmem:[%s646_s0 + $0x58] sm:$0xff]  ;;  %v38_v30 = vld [vmem:[%s646_s0 + $0x60] sm:$0xff]  ;;  %v39_v31 = vld [vmem:[%s646_s0 + $0x68] sm:$0xff]  ;;  %p423_p2 = scmp.lt.s32.totalorder %s421_s24, %s417_s23 }
   0xe   :  { %363 = vmatprep.subr.msk.bf16.mxu0 %vm484_vm1, %v361_v14  ;;  %399 = vmatprep.subr.msk.bf16.mxu1 %vm484_vm1, %v361_v14  ;;  %v379_v29 = vpack.c.bf16 %v37_v28, %v36_v27  ;;  %v385_v32 = vpack.c.bf16 %v39_v31, %v38_v30  ;;  %v40_v33 = vld [vmem:[%s646_s0 + $0x70] sm:$0xff]  ;;  %v41_v34 = vld [vmem:[%s646_s0 + $0x78] sm:$0xff]  ;;  %v23_v36 = vld [vmem:[%s647_s1 + $0x8] sm:$0xff] }
   0xf   :  { %222 = vperm.xlu0 %415, %v216_v19   ;;  %v391_v35 = vpack.c.bf16 %v41_v34, %v40_v33  ;;  %v25_v37 = vld [vmem:[%s647_s1 + $0x18] sm:$0xff]  ;;  %p424_p3 = por %p423_p2, %p422_p1 }
  0x10   :  { %227 = vperm.xlu1 %416, %v217_v20  }
  0x11   :  { %p425_p4 = pnand %p424_p3, %p418_p0 }
  0x13   :  { %232 = vperm.xlu0 %415, %v218_v22  }
  0x14   :  { %237 = vperm.xlu1 %416, %v219_v23  }
  0x15   :  { %366 = vmatpush3.bf16.xpose.msk.msra.mxu0 %vm484_vm1, %v361_v14  ;;  %407 = vmatpush3.bf16.xpose.msk.msra.mxu1 %vm484_vm1, %v361_v14 }
  0x16   :  { %369 = vmatprep.subr.msk.bf16.mxu0 %vm484_vm1, %v367_v21  ;;  %400 = vmatprep.subr.msk.bf16.mxu1 %vm484_vm1, %v367_v21 }
  0x1d   :  { %372 = vmatpush3.bf16.xpose.msk.msra.mxu0 %vm484_vm1, %v367_v21  ;;  %408 = vmatpush3.bf16.xpose.msk.msra.mxu1 %vm484_vm1, %v367_v21 }
  0x1e   :  { %375 = vmatprep.subr.msk.bf16.mxu0 %vm484_vm1, %v373_v26  ;;  %401 = vmatprep.subr.msk.bf16.mxu1 %vm484_vm1, %v373_v26 }
  0x25   :  { %378 = vmatpush3.bf16.xpose.msk.msra.mxu0 %vm484_vm1, %v373_v26  ;;  %409 = vmatpush3.bf16.xpose.msk.msra.mxu1 %vm484_vm1, %v373_v26 }
  0x26   :  { %381 = vmatprep.subr.msk.bf16.mxu0 %vm484_vm1, %v379_v29  ;;  %402 = vmatprep.subr.msk.bf16.mxu1 %vm484_vm1, %v379_v29 }
  0x2d   :  { %384 = vmatpush3.bf16.xpose.msk.msra.mxu0 %vm484_vm1, %v379_v29  ;;  %410 = vmatpush3.bf16.xpose.msk.msra.mxu1 %vm484_vm1, %v379_v29 }
  0x2e   :  { %387 = vmatprep.subr.msk.bf16.mxu0 %vm484_vm1, %v385_v32  ;;  %403 = vmatprep.subr.msk.bf16.mxu1 %vm484_vm1, %v385_v32 }
  0x35   :  { %390 = vmatpush3.bf16.xpose.msk.msra.mxu0 %vm484_vm1, %v385_v32  ;;  %411 = vmatpush3.bf16.xpose.msk.msra.mxu1 %vm484_vm1, %v385_v32 }
  0x36   :  { %393 = vmatprep.subr.msk.bf16.mxu0 %vm484_vm1, %v391_v35  ;;  %404 = vmatprep.subr.msk.bf16.mxu1 %vm484_vm1, %v391_v35 }
  0x3d   :  { %396 = vmatpush3.bf16.xpose.msk.msra.mxu0 %vm484_vm1, %v391_v35  ;;  %412 = vmatpush3.bf16.xpose.msk.msra.mxu1 %vm484_vm1, %v391_v35 }
  0x44   :  { %344 = vmatmul.mubr.msk.f32.vlgmr.msra.gmra.mrb[0].mxu0 %vm66_vm0, %v23_v36  ;;  %347 = vmatmul.mubr.msk.f32.vlgmr.msra.gmra.mrb[0].mxu1 %vm66_vm0, %v25_v37 }
  0x86   :  { %v49_v38 = vpop.permute.xlu0 %48 }
  0x87   :  { %v59_v39 = vpop.permute.xlu1 %58 }
  0x8a   :  { %v54_v40 = vpop.permute.xlu0 %53 }
  0x8b   :  { %v64_v41 = vpop.permute.xlu1 %63 }
  0x8e   :  { %v223_v42 = vpop.permute.xlu0 %222 }
  0x8f   :  { %v228_v51 = vpop.permute.xlu1 %227 }
  0x92   :  { %v233_v58 = vpop.permute.xlu0 %232 }
  0x93   :  { %v238_v61 = vpop.permute.xlu1 %237 }
 0x117   :  { %v345_v43 = vpop.f32.mrb[0].mxu0  ;;  %v348_v44 = vpop.f32.mrb[0].mxu1 }
 0x118   :  { %v199_v45 = vadd.f32 %v345_v43, %v54_v40  ;;  %v193_v46 = vpop.f32.mrb[1].mxu0  ;;  %v203_v47 = vpop.f32.mrb[1].mxu1  ;;  %v209_v48 = vadd.f32 %v348_v44, %v64_v41 }
 0x119   :  { %v194_v49 = vadd.f32 %v193_v46, %v49_v38  ;;  %v204_v50 = vadd.f32 %v203_v47, %v59_v39 }
 0x11a   :  { %v213_v52 = vmax.f32 %v199_v45, 0.0  ;;  %v215_v56 = vmax.f32 %v209_v48, 0.0 }
 0x11b   :  { %v212_v53 = vmax.f32 %v194_v49, 0.0  ;;  %v214_v54 = vmax.f32 %v204_v50, 0.0 }
 0x11c   :  { %v241_v55 = vmul.f32 %v228_v51, %v213_v52  ;;  %v243_v62 = vmul.f32 %v238_v61, %v215_v56 }
 0x11d   :  { %v240_v57 = vmul.f32 %v223_v42, %v212_v53  ;;  %v242_v60 = vmul.f32 %v233_v58, %v214_v54 }
 0x11f   :  { %v244_v59 = vadd.f32 %v241_v55, %v240_v57 }
 0x121   :  { %v245_v63 = vadd.f32 %v244_v59, %v242_v60 }
 0x123   :  { %v246_v0 = vadd.f32 %v245_v63, %v243_v62 }
 0x125   :  { %v247_v1 = vrot.slane %v246_v0, 4 }
 0x127   :  { %v248_v2 = vadd.f32 %v247_v1, %v246_v0 }
 0x129   :  { %v249_v3 = vrot.slane %v248_v2, 2 }
 0x12b   :  { %v250_v4 = vadd.f32 %v249_v3, %v248_v2 }
 0x12d   :  { %v251_v5 = vrot.slane %v250_v4, 1 }
 0x12f   :  { %v252_v7 = vadd.f32 %v251_v5, %v250_v4 }
 0x131   :  { %v255_v8 = vadd.f32 %v254_v6, %v252_v7 }
 0x133   :  { %256 = vst [vmem:[#allocation3] sm:$0x1] %v255_v8 }
 0x134   :  { %428 = shalt.err (!%p425_p4)
}
 0x135   :  { %s429_s27 = scalar_lea.hbm %s651_s5, 16 }
 0x136   :  { %p430_p5 = scmp.ne.s32.totalorder %s651_s5, %s429_s27  ;;  %p433_p6 = scmp.lt.u32.totalorder %s429_s27, %s651_s5 }
 0x138   :  { %p435_p7 = pnand %p433_p6, %p430_p5 }
 0x13a   :  { %438 = shalt.err (!%p435_p7)
}
 0x13b   :  { %266 = dma.vmem_to_hbm [thread:$0]  %s264_s22, 16, %s651_s5, [#allocation4]  }
 0x13c   :  { %439 = dma.done.wait [#allocation4], 16  }
 0x13d   :  { %440 = vsyncadd [#allocation4], 4294967280 }
 0x13e   :  { %270 = vsyncpa [#allocation4], 1 }

</bundles_post_ra>
